<compile_context>
chip_gen: v5e
topology: v5e:2x2
jax: 0.10.0
libtpu: 0.0.40
codegen_flags: <defaults>
</compile_context>

<pallas_src>
import functools

import jax
import jax.numpy as jnp
from jax.experimental import pallas as pl
from jax.experimental.pallas import tpu as pltpu


def _bisenet_head_kernel(x_ref, w3_ref, bn_s_ref, bn_b_ref, w1_ref, b1row_ref,
                         awt_ref, ah_ref, out_ref,
                         *, H, W, Cin, Cmid, Cout, Hout, Wout):
    HW = H * W
    P = W + 1  # flat zero-pad so every 3x3 tap offset is a static in-bounds slice

    # (Cin, H*W) f32, spatial lane-dense.
    x = x_ref[0]
    zpad = jnp.zeros((Cin, P), x.dtype)
    buf = jnp.concatenate([zpad, x, zpad], axis=1)          # (Cin, H*W + 2*(W+1))

    # Column-validity masks; row under/overflow already reads zeros from the pad.
    col = jax.lax.broadcasted_iota(jnp.int32, (Cin, HW), 1) % W
    ok_l = col >= 1          # needed for taps with dx == -1
    ok_r = col <= W - 2      # needed for taps with dx == +1

    # im2col: 9 shifted taps stacked along the contraction axis -> ONE conv matmul.
    taps = []
    for ky in range(3):
        for kx in range(3):
            dy, dx = ky - 1, kx - 1
            start = P + dy * W + dx
            sl = buf[:, start:start + HW]                   # (Cin, H*W)
            if dx == -1:
                sl = jnp.where(ok_l, sl, 0.0)
            elif dx == 1:
                sl = jnp.where(ok_r, sl, 0.0)
            taps.append(sl)
    im2col = jnp.concatenate(taps, axis=0).astype(jnp.bfloat16)   # (9*Cin, H*W)

    # ---- 3x3 conv as one MXU matmul: (Cmid, 9*Cin) @ (9*Cin, H*W), f32 acc ----
    fm = jnp.dot(w3_ref[...], im2col, preferred_element_type=jnp.float32)

    # ---- folded BatchNorm + ReLU (per-channel broadcast along lanes) ----
    fm = jnp.maximum(fm * bn_s_ref[...] + bn_b_ref[...], 0.0)      # (Cmid, H*W)

    # ---- 1x1 conv (bias deferred): (Cout, Cmid) @ (Cmid, H*W) ----
    logit = jnp.dot(w1_ref[...], fm.astype(jnp.bfloat16),
                    preferred_element_type=jnp.float32)            # (Cout, H*W)

    # ---- separable bilinear upsample (align_corners=True), transpose-free ----
    # H-interp first as a small batched matmul over Cout ...
    logit3 = logit.reshape(Cout, H, W).astype(jnp.bfloat16)        # (Cout, H, W)
    ah_b = jnp.broadcast_to(ah_ref[...][None], (Cout, Hout, H))
    u = jnp.einsum("coh,chw->cow", ah_b, logit3,
                   preferred_element_type=jnp.float32)             # (Cout, Hout, W)
    # ... then ONE flat W-interp matmul whose result already matches the flat
    # output block layout (Cout*Hout rows, Wout lanes) -> direct dense stores.
    rows = u.reshape(Cout * Hout, W).astype(jnp.bfloat16)
    o = jnp.dot(rows, awt_ref[...], preferred_element_type=jnp.float32)  # (Cout*Hout, Wout)

    # Conv1x1 bias commutes with the interpolation (rows sum to 1): add once, f32.
    o = o + b1row_ref[...]

    out_ref[0] = o.astype(out_ref.dtype)


def _interp_matrix(out_size, in_size):
    """Dense 1-D linear-interp matrix matching F.interpolate(align_corners=True)."""
    if out_size == in_size:
        return jnp.eye(out_size, dtype=jnp.float32)
    if in_size == 1:
        return jnp.ones((out_size, 1), jnp.float32)
    src = jnp.arange(out_size, dtype=jnp.float32) * (in_size - 1) / (out_size - 1)
    lo = jnp.clip(jnp.floor(src).astype(jnp.int32), 0, in_size - 2)
    frac = src - lo.astype(jnp.float32)
    rows = jnp.arange(out_size)
    m = jnp.zeros((out_size, in_size), jnp.float32)
    m = m.at[rows, lo].add(1.0 - frac)
    m = m.at[rows, lo + 1].add(frac)
    return m


@functools.partial(jax.jit, static_argnames=("scale",))
def bisenet_head_forward(x_nchw, params, scale):
    N, Cin, H, W = x_nchw.shape
    Cmid = params["w3"].shape[-1]
    Cout = params["w1"].shape[-1]
    Hout, Wout = H * scale, W * scale
    HW = H * W

    # Free reshape of the native NCHW bytes: spatial becomes one lane-dense axis.
    x_flat = x_nchw.astype(jnp.float32).reshape(N, Cin, HW)

    # One-time (tiny) weight packing: channel-major, bf16 operands for the MXU.
    w3m = jnp.transpose(params["w3"].reshape(9 * Cin, Cmid)).astype(jnp.bfloat16)
    bn_s = params["bn_scale"].reshape(Cmid, 1).astype(jnp.float32)
    bn_b = params["bn_bias"].reshape(Cmid, 1).astype(jnp.float32)
    w1t = jnp.transpose(params["w1"]).astype(jnp.bfloat16)              # (Cout, Cmid)
    # Bias pre-expanded to one value per flat output row (row = c*Hout + h).
    b1row = jnp.repeat(params["b1"].astype(jnp.float32), Hout).reshape(Cout * Hout, 1)
    awt = jnp.transpose(_interp_matrix(Wout, W)).astype(jnp.bfloat16)   # (W, Wout)
    ah = _interp_matrix(Hout, H).astype(jnp.bfloat16)                   # (Hout, H)

    kernel = functools.partial(_bisenet_head_kernel, H=H, W=W, Cin=Cin,
                               Cmid=Cmid, Cout=Cout, Hout=Hout, Wout=Wout)

    flops = 2 * N * (Cmid * 9 * Cin * HW + Cout * Cmid * HW
                     + Cout * Hout * H * W + Cout * Hout * W * Wout)
    bytes_accessed = (x_flat.size * 4 + N * Cout * Hout * Wout * 4
                      + (w3m.size + w1t.size + awt.size + ah.size) * 2
                      + (bn_s.size + bn_b.size + b1row.size) * 4)

    # Rough per-step VMEM working set (in/out double buffers + im2col/fm/interp temps).
    est = (2 * (Cin * HW * 4 + Cout * Hout * Wout * 4)
           + 9 * Cin * HW * 6 + Cmid * HW * 4 + Cout * HW * 4
           + Cout * Hout * (W + Wout) * 4
           + (w3m.size + w1t.size + awt.size + ah.size) * 4)
    vmem_limit = int(min(64 * 1024 * 1024, max(32 * 1024 * 1024, 3 * est)))

    # TODO(synk): for large resolutions add a row-tile grid axis (input rows + 1-row
    # halo, ah sliced per tile) so the per-step block stays within v7x's 64 MiB VMEM.
    out = pl.pallas_call(
        kernel,
        out_shape=jax.ShapeDtypeStruct((N, Cout * Hout, Wout), jnp.float32),
        grid_spec=pltpu.PrefetchScalarGridSpec(
            num_scalar_prefetch=0,
            grid=(N,),
            in_specs=[
                pl.BlockSpec((1, Cin, HW), lambda n: (n, 0, 0)),
                pl.BlockSpec((Cmid, 9 * Cin), lambda n: (0, 0)),
                pl.BlockSpec((Cmid, 1), lambda n: (0, 0)),
                pl.BlockSpec((Cmid, 1), lambda n: (0, 0)),
                pl.BlockSpec((Cout, Cmid), lambda n: (0, 0)),
                pl.BlockSpec((Cout * Hout, 1), lambda n: (0, 0)),
                pl.BlockSpec((W, Wout), lambda n: (0, 0)),
                pl.BlockSpec((Hout, H), lambda n: (0, 0)),
            ],
            out_specs=pl.BlockSpec((1, Cout * Hout, Wout), lambda n: (n, 0, 0)),
        ),
        compiler_params=pltpu.CompilerParams(
            dimension_semantics=("parallel",),
            vmem_limit_bytes=vmem_limit),
        cost_estimate=pl.CostEstimate(flops=flops, transcendentals=0,
                                      bytes_accessed=bytes_accessed),
    )(x_flat, w3m, bn_s, bn_b, w1t, b1row, awt, ah)

    # Flat rows are already (c, h)-major: free reshape back to NCHW.
    return out.reshape(N, Cout, Hout, Wout)


def make_params(key, in_planes, out_planes, is_aux=False):
    cmid = 128 if is_aux else 64
    k = jax.random.split(key, 7)
    # PyTorch conv weight (Cout, Cin, kh, kw) stored here as (kh, kw, Cin, Cout).
    w3 = 0.1 * jax.random.normal(k[0], (3, 3, in_planes, cmid), jnp.float32)
    gamma = 1.0 + 0.1 * jax.random.normal(k[1], (cmid,), jnp.float32)
    beta = 0.1 * jax.random.normal(k[2], (cmid,), jnp.float32)
    run_mean = 0.1 * jax.random.normal(k[3], (cmid,), jnp.float32)
    run_var = 1.0 + 0.5 * jnp.abs(jax.random.normal(k[4], (cmid,), jnp.float32))
    eps = 1e-5
    bn_scale = gamma / jnp.sqrt(run_var + eps)
    bn_bias = beta - run_mean * bn_scale
    w1 = 0.1 * jax.random.normal(k[5], (cmid, out_planes), jnp.float32)
    b1 = 0.1 * jax.random.normal(k[6], (out_planes,), jnp.float32)
    return {"w3": w3, "bn_scale": bn_scale, "bn_bias": bn_bias, "w1": w1, "b1": b1}


def _reference_forward(x_nchw, params, scale):
    """Pure-JAX f32 reference (lax.conv) for a correctness cross-check."""
    w3_oihw = jnp.transpose(params["w3"], (3, 2, 0, 1))   # (Cmid, Cin, 3, 3)
    fm = jax.lax.conv_general_dilated(
        x_nchw.astype(jnp.float32), w3_oihw, window_strides=(1, 1),
        padding=((1, 1), (1, 1)), dimension_numbers=("NCHW", "OIHW", "NCHW"))
    fm = fm * params["bn_scale"][None, :, None, None] + \
         params["bn_bias"][None, :, None, None]
    fm = jnp.maximum(fm, 0.0)
    out = jnp.einsum("nchw,cd->ndhw", fm, params["w1"]) + \
          params["b1"][None, :, None, None]
    if scale > 1:
        _, _, H, W = out.shape
        ah = _interp_matrix(H * scale, H)
        aw = _interp_matrix(W * scale, W)
        out = jnp.einsum("oh,nchw->ncow", ah, out)
        out = jnp.einsum("pw,ncow->ncop", aw, out)
    return out


if __name__ == "__main__":
    key = jax.random.PRNGKey(0)
    kx, kp = jax.random.split(key)

    N, Cin, H, W = 2, 4, 16, 16
    out_planes = 5
    scale = 2

    x = jax.random.normal(kx, (N, Cin, H, W), jnp.float32)
    params = make_params(kp, Cin, out_planes, is_aux=False)

    out = jax.block_until_ready(bisenet_head_forward(x, params, scale))
    ref = _reference_forward(x, params, scale)

    assert out.shape == (N, out_planes, H * scale, W * scale), out.shape
    max_err = float(jnp.max(jnp.abs(out - ref)))
    rel_err = float(jnp.linalg.norm(out - ref) / (jnp.linalg.norm(ref) + 1e-9))
    # bf16 MXU operands with f32 accumulation -> tolerance is bf16-level.
    assert max_err < 1.5e-1 and rel_err < 3e-2, (max_err, rel_err)

    print("KERNEL_OK")
</pallas_src>

<mosaic_0001>
module attributes {stable_mosaic.version = 11 : i64} {
  func.func @_bisenet_head_kernel(%arg0: i32, %arg1: memref<1x4x256xf32, #tpu.memory_space<vmem>>, %arg2: memref<64x36xbf16, #tpu.memory_space<vmem>>, %arg3: memref<64x1xf32, #tpu.memory_space<vmem>>, %arg4: memref<64x1xf32, #tpu.memory_space<vmem>>, %arg5: memref<5x64xbf16, #tpu.memory_space<vmem>>, %arg6: memref<160x1xf32, #tpu.memory_space<vmem>>, %arg7: memref<16x32xbf16, #tpu.memory_space<vmem>>, %arg8: memref<32x16xbf16, #tpu.memory_space<vmem>>, %arg9: memref<1x160x32xf32, #tpu.memory_space<vmem>>) attributes {dimension_semantics = [#tpu.dimension_semantics<parallel>], iteration_bounds = array<i64: 2>, scalar_prefetch = 0 : i64, scratch_operands = 0 : i64, tpu.core_type = #tpu.core_type<tc>, window_params = [{transform_indices = @transform_0, window_bounds = array<i64: 1, 4, 256>}, {pipeline_mode = #tpu.pipeline_mode<synchronous>, transform_indices = @transform_1, window_bounds = array<i64: 64, 36>}, {pipeline_mode = #tpu.pipeline_mode<synchronous>, transform_indices = @transform_2, window_bounds = array<i64: 64, 1>}, {pipeline_mode = #tpu.pipeline_mode<synchronous>, transform_indices = @transform_3, window_bounds = array<i64: 64, 1>}, {pipeline_mode = #tpu.pipeline_mode<synchronous>, transform_indices = @transform_4, window_bounds = array<i64: 5, 64>}, {pipeline_mode = #tpu.pipeline_mode<synchronous>, transform_indices = @transform_5, window_bounds = array<i64: 160, 1>}, {pipeline_mode = #tpu.pipeline_mode<synchronous>, transform_indices = @transform_6, window_bounds = array<i64: 16, 32>}, {pipeline_mode = #tpu.pipeline_mode<synchronous>, transform_indices = @transform_7, window_bounds = array<i64: 32, 16>}, {transform_indices = @transform_8, window_bounds = array<i64: 1, 160, 32>}]} {
    %c0 = arith.constant 0 : index
    %c0_0 = arith.constant 0 : index
    %c0_1 = arith.constant 0 : index
    %0 = vector.load %arg1[%c0, %c0_0, %c0_1] : memref<1x4x256xf32, #tpu.memory_space<vmem>>, vector<1x4x256xf32>
    %1 = vector.shape_cast %0 : vector<1x4x256xf32> to vector<4x256xf32>
    %cst = arith.constant 0.000000e+00 : f32
    %2 = vector.broadcast %cst : f32 to vector<4x17xf32>
    %3 = tpu.concatenate %2, %1, %2 in 1 : vector<4x17xf32>, vector<4x256xf32>, vector<4x17xf32> -> vector<4x290xf32>
    %4 = tpu.iota {dimensions = array<i32: 1>} : vector<4x256xi32>
    %c16_i32 = arith.constant 16 : i32
    %c0_i32 = arith.constant 0 : i32
    %5 = arith.cmpi eq, %c16_i32, %c0_i32 : i32
    %c1_i32 = arith.constant 1 : i32
    %6 = arith.select %5, %c1_i32, %c16_i32 : i32
    %7 = vector.broadcast %6 : i32 to vector<4x256xi32>
    %8 = arith.remsi %4, %7 : vector<4x256xi32>
    %c0_i32_2 = arith.constant 0 : i32
    %9 = vector.broadcast %c0_i32_2 : i32 to vector<4x256xi32>
    %10 = arith.cmpi ne, %8, %9 : vector<4x256xi32>
    %c0_i32_3 = arith.constant 0 : i32
    %11 = vector.broadcast %c0_i32_3 : i32 to vector<4x256xi32>
    %12 = arith.cmpi slt, %8, %11 : vector<4x256xi32>
    %c0_i32_4 = arith.constant 0 : i32
    %13 = arith.cmpi slt, %6, %c0_i32_4 : i32
    %14 = vector.broadcast %13 : i1 to vector<4x256xi1>
    %15 = vector.broadcast %14 : vector<4x256xi1> to vector<4x256xi1>
    %16 = arith.xori %12, %15 : vector<4x256xi1>
    %17 = arith.andi %16, %10 : vector<4x256xi1>
    %18 = vector.broadcast %6 : i32 to vector<4x256xi32>
    %19 = arith.addi %8, %18 : vector<4x256xi32>
    %20 = arith.select %17, %19, %8 : vector<4x256xi1>, vector<4x256xi32>
    %c1_i32_5 = arith.constant 1 : i32
    %21 = vector.broadcast %c1_i32_5 : i32 to vector<4x256xi32>
    %22 = arith.cmpi sge, %20, %21 : vector<4x256xi32>
    %c14_i32 = arith.constant 14 : i32
    %23 = vector.broadcast %c14_i32 : i32 to vector<4x256xi32>
    %24 = arith.cmpi sle, %20, %23 : vector<4x256xi32>
    %25 = vector.extract_strided_slice %3 {offsets = [0, 0], sizes = [4, 256], strides = [1, 1]} : vector<4x290xf32> to vector<4x256xf32>
    %cst_6 = arith.constant 0.000000e+00 : f32
    %26 = vector.broadcast %cst_6 : f32 to vector<4x256xf32>
    %27 = arith.select %22, %25, %26 : vector<4x256xi1>, vector<4x256xf32>
    %28 = vector.extract_strided_slice %3 {offsets = [0, 1], sizes = [4, 256], strides = [1, 1]} : vector<4x290xf32> to vector<4x256xf32>
    %29 = vector.extract_strided_slice %3 {offsets = [0, 2], sizes = [4, 256], strides = [1, 1]} : vector<4x290xf32> to vector<4x256xf32>
    %cst_7 = arith.constant 0.000000e+00 : f32
    %30 = vector.broadcast %cst_7 : f32 to vector<4x256xf32>
    %31 = arith.select %24, %29, %30 : vector<4x256xi1>, vector<4x256xf32>
    %32 = vector.extract_strided_slice %3 {offsets = [0, 16], sizes = [4, 256], strides = [1, 1]} : vector<4x290xf32> to vector<4x256xf32>
    %cst_8 = arith.constant 0.000000e+00 : f32
    %33 = vector.broadcast %cst_8 : f32 to vector<4x256xf32>
    %34 = arith.select %22, %32, %33 : vector<4x256xi1>, vector<4x256xf32>
    %35 = vector.extract_strided_slice %3 {offsets = [0, 17], sizes = [4, 256], strides = [1, 1]} : vector<4x290xf32> to vector<4x256xf32>
    %36 = vector.extract_strided_slice %3 {offsets = [0, 18], sizes = [4, 256], strides = [1, 1]} : vector<4x290xf32> to vector<4x256xf32>
    %cst_9 = arith.constant 0.000000e+00 : f32
    %37 = vector.broadcast %cst_9 : f32 to vector<4x256xf32>
    %38 = arith.select %24, %36, %37 : vector<4x256xi1>, vector<4x256xf32>
    %39 = vector.extract_strided_slice %3 {offsets = [0, 32], sizes = [4, 256], strides = [1, 1]} : vector<4x290xf32> to vector<4x256xf32>
    %cst_10 = arith.constant 0.000000e+00 : f32
    %40 = vector.broadcast %cst_10 : f32 to vector<4x256xf32>
    %41 = arith.select %22, %39, %40 : vector<4x256xi1>, vector<4x256xf32>
    %42 = vector.extract_strided_slice %3 {offsets = [0, 33], sizes = [4, 256], strides = [1, 1]} : vector<4x290xf32> to vector<4x256xf32>
    %43 = vector.extract_strided_slice %3 {offsets = [0, 34], sizes = [4, 256], strides = [1, 1]} : vector<4x290xf32> to vector<4x256xf32>
    %cst_11 = arith.constant 0.000000e+00 : f32
    %44 = vector.broadcast %cst_11 : f32 to vector<4x256xf32>
    %45 = arith.select %24, %43, %44 : vector<4x256xi1>, vector<4x256xf32>
    %46 = tpu.concatenate %27, %28, %31, %34, %35, %38, %41, %42, %45 in 0 : vector<4x256xf32>, vector<4x256xf32>, vector<4x256xf32>, vector<4x256xf32>, vector<4x256xf32>, vector<4x256xf32>, vector<4x256xf32>, vector<4x256xf32>, vector<4x256xf32> -> vector<36x256xf32>
    %47 = arith.truncf %46 : vector<36x256xf32> to vector<36x256xbf16>
    %c0_12 = arith.constant 0 : index
    %c0_13 = arith.constant 0 : index
    %48 = vector.load %arg2[%c0_12, %c0_13] : memref<64x36xbf16, #tpu.memory_space<vmem>>, vector<64x36xbf16>
    %cst_14 = arith.constant dense<0.000000e+00> : vector<64x256xf32>
    %49 = tpu.matmul %48, %47, %cst_14 {dimension_numbers = #tpu.dot_dimension_numbers<[1], [0], [0], [1], [0, 0, 1, 1], [], []>} : vector<64x36xbf16>, vector<36x256xbf16>, vector<64x256xf32> -> vector<64x256xf32>
    %c0_15 = arith.constant 0 : index
    %c0_16 = arith.constant 0 : index
    %50 = vector.load %arg3[%c0_15, %c0_16] : memref<64x1xf32, #tpu.memory_space<vmem>>, vector<64x1xf32>
    %51 = vector.broadcast %50 : vector<64x1xf32> to vector<64x256xf32>
    %52 = arith.mulf %49, %51 : vector<64x256xf32>
    %c0_17 = arith.constant 0 : index
    %c0_18 = arith.constant 0 : index
    %53 = vector.load %arg4[%c0_17, %c0_18] : memref<64x1xf32, #tpu.memory_space<vmem>>, vector<64x1xf32>
    %54 = vector.broadcast %53 : vector<64x1xf32> to vector<64x256xf32>
    %55 = arith.addf %52, %54 : vector<64x256xf32>
    %cst_19 = arith.constant 0.000000e+00 : f32
    %56 = vector.broadcast %cst_19 : f32 to vector<64x256xf32>
    %57 = arith.maximumf %55, %56 : vector<64x256xf32>
    %c0_20 = arith.constant 0 : index
    %c0_21 = arith.constant 0 : index
    %58 = vector.load %arg5[%c0_20, %c0_21] : memref<5x64xbf16, #tpu.memory_space<vmem>>, vector<5x64xbf16>
    %59 = arith.truncf %57 : vector<64x256xf32> to vector<64x256xbf16>
    %cst_22 = arith.constant dense<0.000000e+00> : vector<5x256xf32>
    %60 = tpu.matmul %58, %59, %cst_22 {dimension_numbers = #tpu.dot_dimension_numbers<[1], [0], [0], [1], [0, 0, 1, 1], [], []>} : vector<5x64xbf16>, vector<64x256xbf16>, vector<5x256xf32> -> vector<5x256xf32>
    %61 = vector.shape_cast %60 : vector<5x256xf32> to vector<5x16x16xf32>
    %62 = arith.truncf %61 : vector<5x16x16xf32> to vector<5x16x16xbf16>
    %c0_23 = arith.constant 0 : index
    %c0_24 = arith.constant 0 : index
    %63 = vector.load %arg8[%c0_23, %c0_24] : memref<32x16xbf16, #tpu.memory_space<vmem>>, vector<32x16xbf16>
    %64 = vector.shape_cast %63 : vector<32x16xbf16> to vector<1x32x16xbf16>
    %65 = vector.shape_cast %64 : vector<1x32x16xbf16> to vector<1x32x16xbf16>
    %66 = vector.broadcast %65 : vector<1x32x16xbf16> to vector<5x32x16xbf16>
    "tpu.trace_start"() <{level = 10 : i32, message = "coh,chw->cow"}> : () -> ()
    %cst_25 = arith.constant dense<0.000000e+00> : vector<5x32x16xf32>
    %67 = tpu.matmul %66, %62, %cst_25 {dimension_numbers = #tpu.dot_dimension_numbers<[2], [1], [1], [2], [0, 0, 0, 1, 1, 2], [0], [0]>} : vector<5x32x16xbf16>, vector<5x16x16xbf16>, vector<5x32x16xf32> -> vector<5x32x16xf32>
    "tpu.trace_stop"() : () -> ()
    %68 = vector.shape_cast %67 : vector<5x32x16xf32> to vector<160x16xf32>
    %69 = arith.truncf %68 : vector<160x16xf32> to vector<160x16xbf16>
    %c0_26 = arith.constant 0 : index
    %c0_27 = arith.constant 0 : index
    %70 = vector.load %arg7[%c0_26, %c0_27] : memref<16x32xbf16, #tpu.memory_space<vmem>>, vector<16x32xbf16>
    %cst_28 = arith.constant dense<0.000000e+00> : vector<160x32xf32>
    %71 = tpu.matmul %69, %70, %cst_28 {dimension_numbers = #tpu.dot_dimension_numbers<[1], [0], [0], [1], [0, 0, 1, 1], [], []>} : vector<160x16xbf16>, vector<16x32xbf16>, vector<160x32xf32> -> vector<160x32xf32>
    %c0_29 = arith.constant 0 : index
    %c0_30 = arith.constant 0 : index
    %72 = vector.load %arg6[%c0_29, %c0_30] : memref<160x1xf32, #tpu.memory_space<vmem>>, vector<160x1xf32>
    %73 = vector.broadcast %72 : vector<160x1xf32> to vector<160x32xf32>
    %74 = arith.addf %71, %73 : vector<160x32xf32>
    %c0_31 = arith.constant 0 : index
    %c0_32 = arith.constant 0 : index
    %c0_33 = arith.constant 0 : index
    %75 = vector.load %arg9[%c0_31, %c0_32, %c0_33] : memref<1x160x32xf32, #tpu.memory_space<vmem>>, vector<1x160x32xf32>
    %76 = vector.shape_cast %75 : vector<1x160x32xf32> to vector<160x32xf32>
    %77 = vector.shape_cast %74 : vector<160x32xf32> to vector<1x160x32xf32>
    tpu.vector_store %arg9[%c0_31, %c0_32, %c0_33], %77 {strides = array<i32>} : memref<1x160x32xf32, #tpu.memory_space<vmem>>, vector<1x160x32xf32>,
    return
  }
  func.func @transform_0(%arg0: i32) -> (i32, i32, i32) {
    %c0_i32 = arith.constant 0 : i32
    %c0_i32_0 = arith.constant 0 : i32
    %c0_i32_1 = arith.constant 0 : i32
    return %arg0, %c0_i32, %c0_i32_0 : i32, i32, i32
  }
  func.func @transform_1(%arg0: i32) -> (i32, i32) {
    %c0_i32 = arith.constant 0 : i32
    %c0_i32_0 = arith.constant 0 : i32
    %c0_i32_1 = arith.constant 0 : i32
    return %c0_i32, %c0_i32_0 : i32, i32
  }
  func.func @transform_2(%arg0: i32) -> (i32, i32) {
    %c0_i32 = arith.constant 0 : i32
    %c0_i32_0 = arith.constant 0 : i32
    %c0_i32_1 = arith.constant 0 : i32
    return %c0_i32, %c0_i32_0 : i32, i32
  }
  func.func @transform_3(%arg0: i32) -> (i32, i32) {
    %c0_i32 = arith.constant 0 : i32
    %c0_i32_0 = arith.constant 0 : i32
    %c0_i32_1 = arith.constant 0 : i32
    return %c0_i32, %c0_i32_0 : i32, i32
  }
  func.func @transform_4(%arg0: i32) -> (i32, i32) {
    %c0_i32 = arith.constant 0 : i32
    %c0_i32_0 = arith.constant 0 : i32
    %c0_i32_1 = arith.constant 0 : i32
    return %c0_i32, %c0_i32_0 : i32, i32
  }
  func.func @transform_5(%arg0: i32) -> (i32, i32) {
    %c0_i32 = arith.constant 0 : i32
    %c0_i32_0 = arith.constant 0 : i32
    %c0_i32_1 = arith.constant 0 : i32
    return %c0_i32, %c0_i32_0 : i32, i32
  }
  func.func @transform_6(%arg0: i32) -> (i32, i32) {
    %c0_i32 = arith.constant 0 : i32
    %c0_i32_0 = arith.constant 0 : i32
    %c0_i32_1 = arith.constant 0 : i32
    return %c0_i32, %c0_i32_0 : i32, i32
  }
  func.func @transform_7(%arg0: i32) -> (i32, i32) {
    %c0_i32 = arith.constant 0 : i32
    %c0_i32_0 = arith.constant 0 : i32
    %c0_i32_1 = arith.constant 0 : i32
    return %c0_i32, %c0_i32_0 : i32, i32
  }
  func.func @transform_8(%arg0: i32) -> (i32, i32, i32) {
    %c0_i32 = arith.constant 0 : i32
    %c0_i32_0 = arith.constant 0 : i32
    %c0_i32_1 = arith.constant 0 : i32
    return %arg0, %c0_i32, %c0_i32_0 : i32, i32, i32
  }
}

</mosaic_0001>

<bundles_post_ra>
// kernel: bisenet_head_forward.1
= control target key start
LH: loop header
LB: loop body
LE: loop exit
PB: predicated region body
PF: predicated region fallthrough
CT: control target
= control target key end

     0   :  { %13 = vsyncpa [#allocation3], 0  ;;  %s2360_s0 = inlined_call_operand.vmem [shape: f32[2,4,256], index: 0, kind: input, shape index: {}]   ;;  %s2361_s1 = inlined_call_operand.vmem [shape: bf16[64,36], index: 1, kind: input, shape index: {}]   ;;  %s2362_s2 = inlined_call_operand.vmem [shape: f32[64,1], index: 2, kind: input, shape index: {}]   ;;  %s2363_s3 = inlined_call_operand.vmem [shape: f32[64,1], index: 3, kind: input, shape index: {}]   ;;  %s2364_s4 = inlined_call_operand.vmem [shape: bf16[5,64], index: 4, kind: input, shape index: {}]   ;;  %s2365_s5 = inlined_call_operand.vmem [shape: f32[160,1], index: 5, kind: input, shape index: {}]   ;;  %s2366_s6 = inlined_call_operand.vmem [shape: bf16[16,32], index: 6, kind: input, shape index: {}]   ;;  %s2367_s7 = inlined_call_operand.vmem [shape: bf16[32,16], index: 7, kind: input, shape index: {}]   ;;  %s2368_s8 = inlined_call_operand.hbm [shape: f32[2,160,32], index: 8, kind: output, shape index: {}]  }
   0x1   :  { %15 = vsyncpa [#allocation3 + $0x1], 0  ;;  %s1838_s27 = smov 0   ;;  %s1840_s28 = smov 0  }
   0x2   :  { %s1842_s29 = smov 0   ;;  %s1844_s30 = smov 0  }
   0x3 LB: > { %s1859_s9 = sadd.s32 4294967295, %s1772_s30   ;;  %s1488_s10 = sadd.s32 4294967294, %s1772_s30   ;;  %s1772_s30 = sphi %s1844_s30, %s2382_s30   ;;  %s1768_s29 = sphi %s1842_s29, %s2381_s29   ;;  %s1764_s28 = sphi %s1840_s28, %s2380_s28   ;;  %s1760_s27 = sphi %s1838_s27, %s2379_s27  }
   0x4   : > { %s1863_s11 = sadd.s32 1, %s1772_s30   ;;  %s201_s12 = sadd.s32 1, %s1768_s29 }
   0x5   : > { %s198_s13 = ssub.s32 %s1772_s30, %s1863_s11  ;;  %p211_p0 = scmp.ne.s32.totalorder %s1768_s29, %s1764_s28 }
   0x6   : > { %p199_p1 = scmp.eq.s32.totalorder %s198_s13, 0  ;;  %p212_p2 = scmp.eq.s32.totalorder %s1859_s9, 1 }
   0x7   : > { %p217_p3 = scmp.ne.s32.totalorder %s1764_s28, %s1760_s27  ;;  %p218_p4 = scmp.eq.s32.totalorder %s1488_s10, 1 }
   0x8   : > { %s1874_s14 = scalar_select %p199_p1, %s1768_s29, %s201_s12  }
   0x9   : > { %p1876_p5 = por %p212_p2, %p211_p0  ;;  %p1880_p6 = por %p218_p4, %p217_p3 }
   0xa   : > { %p1491_p7 = scmp.ge.s32.totalorder %s1772_s30, 1  ;;  %p265_p8 = scmp.lt.s32.totalorder %s1772_s30, 3 }
   0xc   : > { %p266_p9 = pnand %p1491_p7, %p265_p8 }
   0xd   : > { %p299_p10 = scmp.lt.s32.totalorder (!%p266_p9), %s1859_s9, 1  ;;  %s1774_s22 = smov (!%p266_p9), 17  }
   0xe   : > { %269 = sbr.rel (%p266_p9) target bundleno = 1193 (0x4a9), region = 52  ;;  %s1775_s23 = smov (!%p266_p9), 111  }
   0xf   : > { %s1776_s24 = smov (!%p266_p9), 110   ;;  %s1777_s25 = smov (!%p266_p9), 94  }
  0x10   : > { %s1778_s26 = smov (!%p266_p9), 96   ;;  %s1779_s10 = smov (!%p266_p9), 95  }
  0x11   : > { %s1780_s12 = smov (!%p266_p9), 112   ;;  %s1781_s13 = smov (!%p266_p9), 126  }
  0x12   : > { %s1787_s19 = smov (!%p266_p9), 32  }
  0x13   : > { %s300_s17 = scalar_select %p299_p10, %s1859_s9, 1  ;;  %vm314_vm0 = vcmask 138240   ;;  %v660_v15 = vld [vmem:[%s2363_s3 + $0x30] sm:$0xff]  ;;  %v597_v16 = vld [vmem:[%s2362_s2 + $0x38] sm:$0xff]  ;;  %v1783_v17 = vmov 0   ;;  %v594_v18 = vld [vmem:[%s2362_s2 + $0x20] sm:$0xff]  ;;  %v321_v21 = vlaneseq }
  0x14   : > { %1674 = vset.pattern.permute.xlu1 %v1783_v17  ;;  %1673 = vset.pattern.permute.xlu0 %v1783_v17  ;;  %v658_v19 = vld [vmem:[%s2363_s3 + $0x20] sm:$0xff]  ;;  %v596_v22 = vld [vmem:[%s2362_s2 + $0x30] sm:$0xff]  ;;  %v659_v23 = vld [vmem:[%s2363_s3 + $0x28] sm:$0xff]  ;;  %vm388_vm1 = vcmask 900096   ;;  %vm414_vm2 = vcmask 769024   ;;  %vm525_vm4 = vcmask 1041408  }
  0x15   : > { %s1555_s18 = sshll.u32 %s300_s17, 3  ;;  %s1782_s17 = smov 127   ;;  %1672 = vset.pattern.permute.xlu2 %v1783_v17  ;;  %v593_v24 = vld [vmem:[%s2362_s2 + $0x18] sm:$0xff]  ;;  %v322_v25 = vand.u32 127, %v321_v21  ;;  %v656_v39 = vld [vmem:[%s2363_s3 + $0x10] sm:$0xff]  ;;  %v590_v40 = vld [vmem:[%s2362_s2] sm:$0xff] }
  0x16   : > { %s303_s21 = scalar_lea.vmem %s2360_s0, %s1555_s18  ;;  %v661_v36 = vld [vmem:[%s2363_s3 + $0x38] sm:$0xff]  ;;  %vm447_vm5 = vcmask 908288   ;;  %vm401_vm6 = vcmask 785408   ;;  %vm464_vm7 = vcmask 777216   ;;  %v595_v53 = vld [vmem:[%s2362_s2 + $0x28] sm:$0xff]  ;;  %vm375_vm8 = vcmask 916480  }
  0x17   : > { %v305_v0 = vld [vmem:[%s303_s21] sm:$0xff]  ;;  %v328_v27 = vand.u32 15, %v322_v25  ;;  %v323_v56 = vadd.s32 128, %v322_v25  ;;  %vm469_vm10 = vcmask 1043456   ;;  %vm430_vm11 = vcmask 1039360   ;;  %s1786_s18 = smov 16  }
  0x18   : > { %307 = vst [vmem:[#allocation1] ss:$2 sm:$0xff] %v305_v0  ;;  %vm362_vm13 = vcmask 1031168   ;;  %vm512_vm14 = vcmask 293888  }
  0x19   : > { %vm1939_vm3 = vcmp.le.s32.totalorder %v328_v27, 14  ;;  %vm1980_vm9 = vcmp.ge.s32.totalorder %v328_v27, 1 }
  0x1f   : > { %v308_v1 = vld.sshfl [vmem:[#allocation1] sm:$0xff pattern:$0x75316420]  ;;  %v309_v2 = vld.sshfl [vmem:[#allocation1 + $0x8] sm:$0xff pattern:$0x75316420] }
  0x20   : > { %v1627_v3 = vpack.i.bf16 %v309_v2, %v308_v1  ;;  %v591_v2 = vld [vmem:[%s2362_s2 + $0x8] sm:$0xff] }
  0x22   : > { %1628 = vrot.lane.b32.xlu0 %v1627_v3, %s1774_s22 }
  0x94   : > { %v1629_v4 = vpop.permute.xlu0 %1628 }
  0x95   : > { %v1631_v5 = vunpack.i.h.bf16 %v1629_v4  ;;  %v1630_v6 = vunpack.i.l.bf16 %v1629_v4 }
  0x97   : > { %v1892_v7 = vsel %vm314_vm0, %v1630_v6, %v1631_v5  ;;  %v1895_v8 = vsel %vm314_vm0, 0.0, %v1630_v6  ;;  %v320_v13 = vsel %vm314_vm0, %v1631_v5, 0.0  ;;  %v335_v5 = vand.u32 15, %v323_v56 }
  0x98   : > { %v1647_v9 = vpack.i.bf16 %v1892_v7, %v1895_v8  ;;  %v421_v10 = vrot.slane %v1895_v8, 4  ;;  %v422_v11 = vrot.slane %v1892_v7, 4  ;;  %v423_v14 = vrot.slane %v320_v13, 4 }
  0x99   : > { %vm2008_vm12 = vcmp.le.s32.totalorder %v335_v5, 14  ;;  %vm2049_vm15 = vcmp.ge.s32.totalorder %v335_v5, 1  ;;  %vm743_vm0 = vcmask 523264  }
  0x9a   : > { %1648 = vrot.lane.b32.xlu2 %v1647_v9, %s1775_s23  ;;  %1638 = vrot.lane.b32.xlu1 %v1647_v9, %s1776_s24  ;;  %v1662_v12 = vpack.i.bf16 %v422_v11, %v421_v10  ;;  %v353_v56 = vsel %vm2049_vm15, %v1892_v7, 0.0  ;;  %v1559_v7 = vld [vmem:[%s2361_s1 + $0x18] sm:$0xff] }
  0x9b   : > { %1633 = vrot.lane.b32.xlu0 %v1647_v9, %s1777_s25 }
  0xa2   : > { %1643 = vrot.lane.b32.xlu1 %v1647_v9, %s1778_s26  ;;  %1663 = vrot.lane.b32.xlu2 %v1662_v12, %s1779_s10 }
  0xa3   : > { %1653 = vrot.lane.b32.xlu0 %v1647_v9, %s1780_s12 }
  0xaa   : > { %1658 = vrot.lane.b32.xlu1 %v1647_v9, %s1781_s13  ;;  %1668 = vrot.lane.b32.xlu2 %v1662_v12, %s1782_s17  ;;  %v655_v9 = vld [vmem:[%s2363_s3 + $0x8] sm:$0xff] }
  0xab   : > { %412 = vrot.lane.b32.xlu0 %v320_v13, %s1777_s25 }
  0xb2   : > { %386 = vrot.lane.b32.xlu1 %v320_v13, %s1776_s24  ;;  %399 = vrot.lane.b32.xlu2 %v320_v13, %s1778_s26  ;;  %s1788_s24 = smov 64  }
  0xb3   : > { %445 = vrot.lane.b32.xlu0 %v320_v13, %s1775_s23 }
  0xba   : > { %462 = vrot.lane.b32.xlu1 %v423_v14, %s1779_s10  ;;  %373 = vrot.lane.b32.xlu2 %v320_v13, %s1780_s12 }
  0xbb   : > { %360 = vrot.lane.b32.xlu0 %v320_v13, %s1781_s13  ;;  %s1784_s13 = smov 48  }
  0xc2   : > { %428 = vrot.lane.b32.xlu1 %v423_v14, %s1782_s17  ;;  %630 = vperm.xlu2 %1672, %v596_v22   ;;  %s1785_s17 = smov 80  }
  0xc3   : > { %635 = vperm.xlu0 %1673, %v597_v16   ;;  %v592_v16 = vld [vmem:[%s2362_s2 + $0x10] sm:$0xff] }
  0xca   : > { %694 = vperm.xlu1 %1674, %v660_v15   ;;  %699 = vperm.xlu2 %1672, %v661_v36  }
  0xcb   : > { %684 = vperm.xlu0 %1673, %v658_v19  }
  0xd2   : > { %620 = vperm.xlu1 %1674, %v594_v18   ;;  %625 = vperm.xlu2 %1672, %v595_v53  }
  0xd3   : > { %615 = vperm.xlu0 %1673, %v593_v24   ;;  %v352_v24 = vsel %vm1980_vm9, %v1895_v8, 0.0 }
  0xda   : > { %689 = vperm.xlu1 %1674, %v659_v23   ;;  %610 = vperm.xlu2 %1672, %v592_v16  }
  0xdb   : > { %600 = vperm.xlu0 %1673, %v590_v40  }
  0xe2   : > { %674 = vperm.xlu1 %1674, %v656_v39  }
  0xe3   : > { %669 = vperm.xlu0 %1673, %v655_v9  }
  0xea   : > { %605 = vperm.xlu1 %1674, %v591_v2  }
  0xf4   : > { %v1918_v20 = vpop.permute.xlu2 %1648 }
  0xf5   : > { %v1651_v43 = vunpack.i.h.bf16 %v1918_v20  ;;  %v1650_v44 = vunpack.i.l.bf16 %v1918_v20 }
  0xf7   : > { %v448_v61 = vsel %vm447_vm5, %v1650_v44, %v1651_v43 }
  0xfc   : > { %v1931_v28 = vpop.permute.xlu2 %1663 }
  0xfd   : > { %v1666_v45 = vunpack.i.h.bf16 %v1931_v28  ;;  %v1665_v46 = vunpack.i.l.bf16 %v1931_v28 }
  0xff   : > { %v465_v62 = vsel %vm464_vm7, %v1665_v46, %v1666_v45 }
 0x104   : > { %v1978_v57 = vpop.permute.xlu2 %1668 }
 0x105   : > { %v1671_v3 = vunpack.i.h.bf16 %v1978_v57  ;;  %v1670_v4 = vunpack.i.l.bf16 %v1978_v57  ;;  %v1558_v57 = vld [vmem:[%s2361_s1 + $0x10] sm:$0xff] }
 0x107   : > { %v431_v18 = vsel %vm430_vm11, %v1670_v4, %v1671_v3 }
 0x108   : > { %v470_v27 = vsel %vm469_vm10, %v352_v24, %v431_v18 }
 0x10c   : > { %v1929_v26 = vpop.permute.xlu1 %1638 }
 0x10d   : > { %v1641_v29 = vunpack.i.h.bf16 %v1929_v26  ;;  %v1640_v30 = vunpack.i.l.bf16 %v1929_v26  ;;  %v1935_v31 = vpop.permute.xlu0 %1633 }
 0x10e   : > { %v1636_v32 = vunpack.i.h.bf16 %v1935_v31  ;;  %v1635_v33 = vunpack.i.l.bf16 %v1935_v31 }
 0x10f   : > { %v389_v35 = vsel %vm388_vm1, %v1640_v30, %v1641_v29 }
 0x110   : > { %v415_v37 = vsel %vm414_vm2, %v1635_v33, %v1636_v32  ;;  %v393_v41 = vsel %vm1939_vm3, %v389_v35, 0.0  ;;  %v400_v33 = vpop.permute.xlu2 %399  ;;  %v1556_v35 = vld [vmem:[%s2361_s1] sm:$0xff] }
 0x111   : > { %v419_v38 = vsel %vm1939_vm3, %v415_v37, 0.0  ;;  %v454_v52 = vrot.slane %v393_v41, 4  ;;  %v657_v37 = vld [vmem:[%s2363_s3 + $0x18] sm:$0xff] }
 0x112   : > { %v482_v42 = vpack.c.bf16 %v419_v38, %v419_v38  ;;  %679 = vperm.xlu2 %1672, %v657_v37  }
 0x113   : > { %v474_v0 = vsel %vm469_vm10, %v448_v61, %v454_v52 }
 0x114   : > { %v1966_v47 = vpop.permute.xlu1 %1643  ;;  %v527_v48 = vsel %vm525_vm4, %v482_v42, 0 }
 0x115   : > { %v1646_v49 = vunpack.i.h.bf16 %v1966_v47  ;;  %v1645_v50 = vunpack.i.l.bf16 %v1966_v47  ;;  %v1971_v51 = vpop.permute.xlu0 %1653  ;;  %537 = vmatpush.bf16.msra.mxu0 %v527_v48  ;;  %v654_v48 = vld [vmem:[%s2363_s3] sm:$0xff] }
 0x116   : > { %v1656_v54 = vunpack.i.h.bf16 %v1971_v51  ;;  %v1655_v55 = vunpack.i.l.bf16 %v1971_v51  ;;  %v1557_v51 = vld [vmem:[%s2361_s1 + $0x8] sm:$0xff] }
 0x117   : > { %v402_v59 = vsel %vm401_vm6, %v1645_v50, %v1646_v49  ;;  %v403_v40 = vsel %vm401_vm6, %v1646_v49, %v400_v33 }
 0x118   : > { %v406_v60 = vsel %vm1980_vm9, %v402_v59, 0.0  ;;  %v376_v63 = vsel %vm375_vm8, %v1655_v55, %v1656_v54  ;;  %v374_v41 = vpop.permute.xlu2 %373  ;;  %v407_v47 = vsel %vm2049_vm15, %v403_v40, 0.0 }
 0x119   : > { %v476_v1 = vsel %vm469_vm10, %v406_v60, %v465_v62  ;;  %v380_v12 = vsel %vm1980_vm9, %v376_v63, 0.0  ;;  %v377_v49 = vsel %vm375_vm8, %v1656_v54, %v374_v41 }
 0x11a   : > { %v480_v6 = vpack.c.bf16 %v476_v1, %v474_v0  ;;  %v437_v22 = vrot.slane %v380_v12, 4  ;;  %664 = vperm.xlu2 %1672, %v654_v48  }
 0x11c   : > { %v1659_v10 = vpop.permute.xlu1 %1658  ;;  %538 = vmatpush.bf16.msra.mxu0 %v480_v6 }
 0x11d   : > { %v1661_v13 = vunpack.i.h.bf16 %v1659_v10  ;;  %v1660_v14 = vunpack.i.l.bf16 %v1659_v10  ;;  %v413_v15 = vpop.permute.xlu0 %412 }
 0x11e   : > { %v416_v17 = vsel %vm414_vm2, %v1636_v32, %v413_v15  ;;  %vm1036_vm2 = vcmask 130048  }
 0x11f   : > { %v420_v19 = vsel %vm2008_vm12, %v416_v17, 0.0  ;;  %v363_v21 = vsel %vm362_vm13, %v1660_v14, %v1661_v13 }
 0x120   : > { %v483_v23 = vpack.c.bf16 %v420_v19, %v420_v19  ;;  %v367_v25 = vsel %vm1939_vm3, %v363_v21, 0.0  ;;  %v631_v63 = vpop.permute.xlu2 %630  ;;  %vm1389_vm3 = vcmask 261120  }
 0x121   : > { %v472_v30 = vsel %vm469_vm10, %v367_v25, %v437_v22 }
 0x122   : > { %v530_v31 = vsel %vm525_vm4, %v483_v23, 0  ;;  %v478_v32 = vpack.c.bf16 %v472_v30, %v470_v27 }
 0x123   : > { %1563 = vmatpush.bf16.msra.mxu2 %v530_v31 }
 0x124   : > { %v387_v36 = vpop.permute.xlu1 %386  ;;  %539 = vmatpush.bf16.msra.mxu0 %v478_v32 }
 0x125   : > { %v390_v8 = vsel %vm388_vm1, %v1641_v29, %v387_v36  ;;  %v446_v34 = vpop.permute.xlu0 %445  ;;  %vm818_vm1 = vcmask 1047556  }
 0x126   : > { %v394_v38 = vsel %vm2008_vm12, %v390_v8, 0.0  ;;  %v449_v42 = vsel %vm447_vm5, %v1651_v43, %v446_v34 }
 0x127   : > { %1510 = vmatmul.msk.bf16.vlgmr.msra.gmra.mxu0 %vm512_vm14, %v1556_v35  ;;  %v455_v39 = vrot.slane %v394_v38, 4 }
 0x128   : > { %566 = vmatpush.bf16.msrb.mxu0 %v530_v31  ;;  %v700_v2 = vpop.permute.xlu2 %699 }
 0x129   : > { %v475_v20 = vsel %vm469_vm10, %v449_v42, %v455_v39 }
 0x12c   : > { %v463_v29 = vpop.permute.xlu1 %462 }
 0x12d   : > { %v466_v44 = vsel %vm464_vm7, %v1666_v45, %v463_v29  ;;  %v361_v46 = vpop.permute.xlu0 %360  ;;  %v381_v45 = vsel %vm2049_vm15, %v377_v49, 0.0 }
 0x12e   : > { %v477_v43 = vsel %vm469_vm10, %v407_v47, %v466_v44  ;;  %v364_v28 = vsel %vm362_vm13, %v1661_v13, %v361_v46  ;;  %v438_v53 = vrot.slane %v381_v45, 4 }
 0x12f   : > { %v481_v50 = vpack.c.bf16 %v477_v43, %v475_v20  ;;  %v368_v52 = vsel %vm2008_vm12, %v364_v28, 0.0 }
 0x130   : > { %v473_v59 = vsel %vm469_vm10, %v368_v52, %v438_v53  ;;  %v626_v10 = vpop.permute.xlu2 %625 }
 0x131   : > { %567 = vmatpush.bf16.msrb.mxu0 %v481_v50  ;;  %1564 = vmatpush.bf16.msra.mxu2 %v481_v50 }
 0x134   : > { %v429_v54 = vpop.permute.xlu1 %428 }
 0x135   : > { %v432_v55 = vsel %vm430_vm11, %v1671_v3, %v429_v54  ;;  %v636_v3 = vpop.permute.xlu0 %635 }
 0x136   : > { %v471_v58 = vsel %vm469_vm10, %v353_v56, %v432_v55 }
 0x137   : > { %1511 = vmatmul.msk.bf16.gmra.mxu0 %vm512_vm14, %v1557_v51  ;;  %v479_v60 = vpack.c.bf16 %v473_v59, %v471_v58 }
 0x138   : > { %v611_v15 = vpop.permute.xlu2 %610 }
 0x139   : > { %568 = vmatpush.bf16.msrb.mxu0 %v479_v60  ;;  %1565 = vmatpush.bf16.msra.mxu2 %v479_v60 }
 0x13c   : > { %1515 = vmatmul.msk.bf16.vlgmr.msra.gmra.mxu2 %vm512_vm14, %v1557_v51  ;;  %v695_v1 = vpop.permute.xlu1 %694 }
 0x13d   : > { %v685_v11 = vpop.permute.xlu0 %684 }
 0x144   : > { %v621_v6 = vpop.permute.xlu1 %620 }
 0x145   : > { %v616_v17 = vpop.permute.xlu0 %615 }
 0x147   : > { %1512 = vmatmul.msk.bf16.gmra.mxu0 %vm512_vm14, %v1558_v57 }
 0x14c   : > { %1516 = vmatmul.msk.bf16.gmra.mxu2 %vm512_vm14, %v1558_v57  ;;  %v690_v13 = vpop.permute.xlu1 %689 }
 0x14d   : > { %v601_v24 = vpop.permute.xlu0 %600 }
 0x154   : > { %v675_v19 = vpop.permute.xlu1 %674 }
 0x155   : > { %v670_v49 = vpop.permute.xlu0 %669 }
 0x157   : > { %1513 = vmatmul.msk.bf16.gmra.mxu0 %vm512_vm14, %v1559_v7 }
 0x15c   : > { %1517 = vmatmul.msk.bf16.gmra.mxu2 %vm512_vm14, %v1559_v7 }
 0x167   : > { %1514 = vmatmul.msk.bf16.vlgmr.msrb.gmra.mxu0 %vm512_vm14, %v1556_v35  ;;  %v606_v35 = vpop.permute.xlu1 %605 }
 0x16c   : > { %v680_v22 = vpop.permute.xlu2 %679 }
 0x174   : > { %v665_v42 = vpop.permute.xlu2 %664 }
 0x1a4   : > { %v541_v61 = vpop.f32.mrf.mxu0 }
 0x1a5   : > { %v638_v26 = vmul.f32 %v601_v24, %v541_v61 }
 0x1a7   : > { %v702_v50 = vadd.f32 %v665_v42, %v638_v26  ;;  %v1183_v26 = vld [vmem:[%s2365_s5 + $0x48] sm:$0xff] }
 0x1a9   : > { %v718_v7 = vmax.f32 %v702_v50, 0.0 }
 0x1ac   : > { %v543_v62 = vpop.f32.mrf.mxu0 }
 0x1ad   : > { %v640_v29 = vmul.f32 %v606_v35, %v543_v62 }
 0x1af   : > { %v704_v45 = vadd.f32 %v670_v49, %v640_v29  ;;  %v1182_v29 = vld [vmem:[%s2365_s5 + $0x40] sm:$0xff] }
 0x1b1   : > { %v720_v61 = vmax.f32 %v704_v45, 0.0 }
 0x1b4   : > { %v546_v0 = vpop.f32.mrf.mxu0 }
 0x1b5   : > { %v642_v33 = vmul.f32 %v611_v15, %v546_v0 }
 0x1b7   : > { %v706_v41 = vadd.f32 %v675_v19, %v642_v33  ;;  %v1175_v33 = vld [vmem:[%s2365_s5 + $0x8] sm:$0xff] }
 0x1b9   : > { %v722_v52 = vmax.f32 %v706_v41, 0.0  ;;  %v1187_v41 = vld [vmem:[%s2365_s5 + $0x68] sm:$0xff] }
 0x1bc   : > { %v548_v4 = vpop.f32.mrf.mxu0 }
 0x1bd   : > { %v644_v36 = vmul.f32 %v616_v17, %v548_v4 }
 0x1bf   : > { %v575_v5 = vpop.f32.mrf.mxu2  ;;  %v708_v44 = vadd.f32 %v680_v22, %v644_v36  ;;  %v1178_v36 = vld [vmem:[%s2365_s5 + $0x20] sm:$0xff] }
 0x1c1   : > { %v724_v51 = vmax.f32 %v708_v44, 0.0  ;;  %v1185_v44 = vld [vmem:[%s2365_s5 + $0x58] sm:$0xff] }
 0x1c3   : > { %v737_v62 = vpack.c.bf16 %v724_v51, %v722_v52 }
 0x1c4   : > { %v551_v9 = vpop.f32.mrf.mxu0 }
 0x1c5   : > { %v646_v25 = vmul.f32 %v621_v6, %v551_v9 }
 0x1c7   : > { %v577_v12 = vpop.f32.mrf.mxu2  ;;  %v710_v8 = vadd.f32 %v685_v11, %v646_v25 }
 0x1c8   : > { %v645_v59 = vmul.f32 %v616_v17, %v577_v12 }
 0x1c9   : > { %v726_v46 = vmax.f32 %v710_v8, 0.0  ;;  %v1177_v8 = vld [vmem:[%s2365_s5 + $0x18] sm:$0xff] }
 0x1cc   : > { %v553_v14 = vpop.f32.mrf.mxu0 }
 0x1cd   : > { %v648_v27 = vmul.f32 %v626_v10, %v553_v14  ;;  %v709_v14 = vadd.f32 %v680_v22, %v645_v59 }
 0x1cf   : > { %v580_v16 = vpop.f32.mrf.mxu2  ;;  %v712_v34 = vadd.f32 %v690_v13, %v648_v27 }
 0x1d0   : > { %v647_v55 = vmul.f32 %v621_v6, %v580_v16  ;;  %v735_v6 = vpack.c.bf16 %v720_v61, %v718_v7 }
 0x1d1   : > { %v728_v47 = vmax.f32 %v712_v34, 0.0  ;;  %v1176_v34 = vld [vmem:[%s2365_s5 + $0x10] sm:$0xff] }
 0x1d2   : > { %v711_v0 = vadd.f32 %v685_v11, %v647_v55 }
 0x1d3   : > { %v739_v54 = vpack.c.bf16 %v728_v47, %v726_v46  ;;  %v1190_v46 = vld [vmem:[%s2365_s5 + $0x80] sm:$0xff]  ;;  %v1189_v47 = vld [vmem:[%s2365_s5 + $0x78] sm:$0xff] }
 0x1d4   : > { %v556_v18 = vpop.f32.mrf.mxu0 }
 0x1d5   : > { %v650_v23 = vmul.f32 %v631_v63, %v556_v18 }
 0x1d7   : > { %v582_v21 = vpop.f32.mrf.mxu2  ;;  %v714_v31 = vadd.f32 %v695_v1, %v650_v23 }
 0x1d8   : > { %v649_v28 = vmul.f32 %v626_v10, %v582_v21 }
 0x1d9   : > { %v730_v39 = vmax.f32 %v714_v31, 0.0 }
 0x1da   : > { %v713_v60 = vadd.f32 %v690_v13, %v649_v28 }
 0x1dc   : > { %v558_v30 = vpop.f32.mrf.mxu0  ;;  %v729_v18 = vmax.f32 %v713_v60, 0.0 }
 0x1dd   : > { %v652_v32 = vmul.f32 %v636_v3, %v558_v30 }
 0x1df   : > { %v716_v37 = vadd.f32 %v700_v2, %v652_v32  ;;  %v585_v38 = vpop.f32.mrf.mxu2 }
 0x1e0   : > { %v651_v20 = vmul.f32 %v631_v63, %v585_v38  ;;  %v643_v63 = vmul.f32 %v611_v15, %v575_v5  ;;  %v725_v5 = vmax.f32 %v709_v14, 0.0  ;;  %v1180_v38 = vld [vmem:[%s2365_s5 + $0x30] sm:$0xff]  ;;  %v1790_v14 = vmov 1934713408  }
 0x1e1   : > { %v732_v40 = vmax.f32 %v716_v37, 0.0  ;;  %v1181_v37 = vld [vmem:[%s2365_s5 + $0x38] sm:$0xff] }
 0x1e2   : > { %v715_v58 = vadd.f32 %v695_v1, %v651_v20  ;;  %v727_v1 = vmax.f32 %v711_v0, 0.0  ;;  %v1192_v20 = vld [vmem:[%s2365_s5 + $0x90] sm:$0xff] }
 0x1e3   : > { %v741_v48 = vpack.c.bf16 %v732_v40, %v730_v39  ;;  %v1179_v39 = vld [vmem:[%s2365_s5 + $0x28] sm:$0xff]  ;;  %v1184_v40 = vld [vmem:[%s2365_s5 + $0x50] sm:$0xff] }
 0x1e4   : > { %v570_v43 = vpop.f32.mrf.mxu0  ;;  %v731_v9 = vmax.f32 %v715_v58, 0.0  ;;  %v740_v12 = vpack.c.bf16 %v729_v18, %v727_v1  ;;  %v871_v18 = vunpack.c.l.s4 %v1790_v14 }
 0x1e5   : > { %751 = vmatpush.bf16.msrb.mxu2 %v741_v48  ;;  %v639_v16 = vmul.f32 %v601_v24, %v570_v43  ;;  %v1188_v48 = vld [vmem:[%s2365_s5 + $0x70] sm:$0xff]  ;;  %v1191_v43 = vld [vmem:[%s2365_s5 + $0x88] sm:$0xff] }
 0x1e7   : > { %v587_v53 = vpop.f32.mrf.mxu2  ;;  %v703_v15 = vadd.f32 %v665_v42, %v639_v16  ;;  %v1186_v42 = vld [vmem:[%s2365_s5 + $0x60] sm:$0xff] }
 0x1e8   : > { %v653_v56 = vmul.f32 %v636_v3, %v587_v53  ;;  %v707_v3 = vadd.f32 %v675_v19, %v643_v63 }
 0x1e9   : > { %752 = vmatpush.bf16.msrb.mxu2 %v739_v54  ;;  %v719_v25 = vmax.f32 %v703_v15, 0.0  ;;  %v1789_v54 = vmov 1983009808   ;;  %v2180_v15 = vunpack.c.0.s8 %v871_v18 }
 0x1ea   : > { %v717_v57 = vadd.f32 %v700_v2, %v653_v56  ;;  %v734_v2 = vld [vmem:[%s2364_s4] sm:$0x7]  ;;  %v723_v13 = vmax.f32 %v707_v3, 0.0  ;;  %v823_v55 = vunpack.c.l.s4 %v1789_v54 }
 0x1ec   : > { %v572_v4 = vpop.f32.mrf.mxu0  ;;  %v733_v10 = vmax.f32 %v717_v57, 0.0  ;;  %v738_v22 = vpack.c.bf16 %v725_v5, %v723_v13 }
 0x1ed   : > { %753 = vmatpush.bf16.msrb.mxu2 %v737_v62  ;;  %v641_v21 = vmul.f32 %v606_v35, %v572_v4  ;;  %v1174_v35 = vld [vmem:[%s2365_s5] sm:$0xff] }
 0x1ee   : > { %v742_v23 = vpack.c.bf16 %v733_v10, %v731_v9  ;;  %v2169_v10 = vunpack.c.0.s8 %v823_v55 }
 0x1ef   : > { %v705_v11 = vadd.f32 %v670_v49, %v641_v21  ;;  %v1193_v49 = vld [vmem:[%s2365_s5 + $0x98] sm:$0xff] }
 0x1f0   : > { %764 = vmatpush.bf16.msra.mxu3 %v742_v23 }
 0x1f1   : > { %754 = vmatpush.bf16.msrb.mxu2 %v735_v6  ;;  %v721_v17 = vmax.f32 %v705_v11, 0.0 }
 0x1f3   : > { %v736_v19 = vpack.c.bf16 %v721_v17, %v719_v25 }
 0x1f4   : > { %765 = vmatpush.bf16.msra.mxu3 %v740_v12  ;;  %1518 = vmatmul.msk.bf16.vlgmr.msrb.gmra.mxu2 %vm743_vm0, %v734_v2 }
 0x1f8   : > { %766 = vmatpush.bf16.msra.mxu3 %v738_v22 }
 0x1fc   : > { %767 = vmatpush.bf16.msra.mxu3 %v736_v19 }
 0x1ff   : > { %1519 = vmatmul.msk.bf16.vlgmr.msra.gmra.mxu3 %vm743_vm0, %v734_v2 }
 0x277   : > { %v2101_v24 = vpop.f32.mrf.mxu2 }
 0x278   : > { %v820_v1 = vrot.slane %v2101_v24, 4 }
 0x27f   : > { %v758_v27 = vpop.f32.mrf.mxu2 }
 0x282   : > { %v2103_v30 = vpop.f32.mrf.mxu3 }
 0x283   : > { %v1685_v31 = vpack.i.bf16 %v2103_v30, %v2101_v24  ;;  %v914_v22 = vrot.slane %v2103_v30, 4 }
 0x285   : > { %1686 = vrot.lane.b32.xlu0 %v1685_v31, %s1784_s13  ;;  %1681 = vrot.lane.b32.xlu2 %v1685_v31, %s1785_s17 }
 0x286   : > { %1676 = vrot.lane.b32.xlu1 %v1685_v31, %s1786_s18  ;;  %s1568_s18 = smul.u32 160, %s1859_s9 }
 0x288   : > { %s1422_s21 = scalar_lea.hbm %s2368_s8, %s1568_s18 }
 0x289   : > { %s1425_s23 = sshll.u32 %s1422_s21, 4  ;;  %s1426_s23 = int_to_ptr.hbm [resolvable:$true] %s1425_s23 }
 0x28a   : > { %v771_v32 = vpop.f32.mrf.mxu3  ;;  %s1724_s9 = sshra.s32 %s1426_s23, 4  ;;  %s1725_s9 = int_to_ptr.hbm [resolvable:$true] %s1724_s9 }
 0x28b   : > { %s1726_s25 = scalar_lea.hbm %s1725_s9, 160  ;;  %p1731_p0 = scmp.lt.s32.totalorder %s1725_s9, %s2368_s8 }
 0x28c   : > { %p1727_p11 = scmp.ne.s32.totalorder %s1725_s9, %s1726_s25 }
 0x28d   : > { %1701 = vrot.lane.b32.xlu0 %v1685_v31, %s1778_s26  ;;  %1696 = vrot.lane.b32.xlu2 %v1685_v31, %s1780_s12  ;;  %s296_s12 = sand.u32 1, %s1764_s28  }
 0x28e   : > { %1691 = vrot.lane.b32.xlu1 %v1685_v31, %s1787_s19  ;;  %s1567_s13 = smul.u32 160, %s296_s12  ;;  %p1728_p12 = pnand %p1727_p11, %p1876_p5 }
 0x290   : > { %s2283_s17 = scalar_lea.vmem [#allocation2], %s1567_s13  ;;  %p1729_p13 = pneg %p1728_p12 }
 0x291   : > { %s1423_s22 = sshll.u32 %s2283_s17, 4  ;;  %s1730_s13 = scalar_lea.hbm %s2368_s8, 320  ;;  %s1424_s22 = int_to_ptr.vmem [resolvable:$true] %s1423_s22 }
 0x292   : > { %p1732_p1 = scmp.lt.s32.totalorder %s1730_s13, %s1726_s25 }
 0x294   : > { %p1733_p2 = por %p1732_p1, %p1731_p0 }
 0x295   : > { %1201 = vperm.xlu0 %1673, %v1175_v33   ;;  %1196 = vperm.xlu2 %1672, %v1174_v35  }
 0x296   : > { %1706 = vrot.lane.b32.xlu1 %v1685_v31, %s1788_s24  ;;  %s1411_s24 = scalar_lea.sflag [#allocation3], %s296_s12  ;;  %p1734_p3 = pnand %p1733_p2, %p1729_p13 }
 0x29d   : > { %1216 = vperm.xlu0 %1673, %v1178_v36   ;;  %1211 = vperm.xlu2 %1672, %v1177_v8  }
 0x29e   : > { %1206 = vperm.xlu1 %1674, %v1176_v34  }
 0x2a5   : > { %1231 = vperm.xlu0 %1673, %v1181_v37   ;;  %1226 = vperm.xlu2 %1672, %v1180_v38  }
 0x2a6   : > { %1221 = vperm.xlu1 %1674, %v1179_v39  }
 0x2ad   : > { %1246 = vperm.xlu0 %1673, %v1184_v40   ;;  %1241 = vperm.xlu2 %1672, %v1183_v26  }
 0x2ae   : > { %1236 = vperm.xlu1 %1674, %v1182_v29  }
 0x2b5   : > { %1261 = vperm.xlu0 %1673, %v1187_v41   ;;  %1256 = vperm.xlu2 %1672, %v1186_v42  }
 0x2b6   : > { %1251 = vperm.xlu1 %1674, %v1185_v44  }
 0x2bd   : > { %1276 = vperm.xlu0 %1673, %v1190_v46   ;;  %1271 = vperm.xlu2 %1672, %v1189_v47  }
 0x2be   : > { %1266 = vperm.xlu1 %1674, %v1188_v48  }
 0x2c5   : > { %1291 = vperm.xlu0 %1673, %v1193_v49   ;;  %1286 = vperm.xlu2 %1672, %v1192_v20  }
 0x2c6   : > { %1281 = vperm.xlu1 %1674, %v1191_v43  }
 0x2df   : > { %v1682_v50 = vpop.permute.xlu2 %1681 }
 0x2e0   : > { %v1684_v45 = vunpack.i.h.bf16 %v1682_v50  ;;  %v1683_v52 = vunpack.i.l.bf16 %v1682_v50 }
 0x2e2   : > { %v924_v57 = vrot.slane %v1684_v45, 4  ;;  %v830_v7 = vrot.slane %v1683_v52, 4 }
 0x2e7   : > { %v1697_v28 = vpop.permute.xlu2 %1696 }
 0x2e8   : > { %v1699_v51 = vunpack.i.h.bf16 %v1697_v28  ;;  %v1698_v53 = vunpack.i.l.bf16 %v1697_v28 }
 0x2ea   : > { %v926_v63 = vrot.slane %v1699_v51, 4  ;;  %v832_v0 = vrot.slane %v1698_v53, 4  ;;  %v831_v21 = vsel %vm818_vm1, %v830_v7, %v1698_v53  ;;  %v925_v23 = vsel %vm818_vm1, %v924_v57, %v1699_v51 }
 0x2eb   : > { %v837_v12 = vperm.slane %v831_v21, %v2169_v10  ;;  %v931_v13 = vperm.slane %v925_v23, %v2169_v10 }
 0x2ec   : > { %v833_v16 = vsel %vm818_vm1, %v1683_v52, %v832_v0  ;;  %v927_v2 = vsel %vm818_vm1, %v1684_v45, %v926_v63 }
 0x2ed   : > { %v841_v33 = vperm.slane %v833_v16, %v2169_v10  ;;  %v935_v35 = vperm.slane %v927_v2, %v2169_v10  ;;  %v866_v40 = vrot.slane %v837_v12, 4  ;;  %v960_v26 = vrot.slane %v931_v13, 4 }
 0x2ef   : > { %v878_v50 = vrot.slane %v841_v33, 4  ;;  %v972_v28 = vrot.slane %v935_v35, 4 }
 0x2f7   : > { %v1687_v56 = vpop.permute.xlu0 %1686 }
 0x2f8   : > { %v1689_v58 = vunpack.i.h.bf16 %v1687_v56  ;;  %v1688_v59 = vunpack.i.l.bf16 %v1687_v56  ;;  %v1677_v60 = vpop.permute.xlu1 %1676 }
 0x2f9   : > { %v1679_v61 = vunpack.i.h.bf16 %v1677_v60  ;;  %v1678_v62 = vunpack.i.l.bf16 %v1677_v60 }
 0x2fa   : > { %v950_v4 = vrot.slane %v1689_v58, 4  ;;  %v856_v9 = vrot.slane %v1688_v59, 4 }
 0x2fb   : > { %v948_v6 = vrot.slane %v1679_v61, 4  ;;  %v854_v3 = vrot.slane %v1678_v62, 4 }
 0x2fc   : > { %v951_v5 = vsel %vm818_vm1, %v1679_v61, %v950_v4  ;;  %v857_v11 = vsel %vm818_vm1, %v1678_v62, %v856_v9 }
 0x2fd   : > { %v949_v25 = vsel %vm818_vm1, %v948_v6, %v1689_v58  ;;  %v855_v19 = vsel %vm818_vm1, %v854_v3, %v1688_v59  ;;  %v959_v36 = vperm.slane %v951_v5, %v2169_v10  ;;  %v865_v8 = vperm.slane %v857_v11, %v2169_v10 }
 0x2fe   : > { %v955_v29 = vperm.slane %v949_v25, %v2169_v10  ;;  %v861_v41 = vperm.slane %v855_v19, %v2169_v10 }
 0x2ff   : > { %v1702_v17 = vpop.permute.xlu0 %1701  ;;  %v990_v45 = vrot.slane %v959_v36, 4  ;;  %v896_v52 = vrot.slane %v865_v8, 4 }
 0x300   : > { %v1704_v27 = vunpack.i.h.bf16 %v1702_v17  ;;  %v1703_v31 = vunpack.i.l.bf16 %v1702_v17  ;;  %v1692_v32 = vpop.permute.xlu1 %1691  ;;  %v978_v54 = vrot.slane %v955_v29, 4  ;;  %v884_v55 = vrot.slane %v861_v41, 4 }
 0x301   : > { %v1694_v46 = vunpack.i.h.bf16 %v1692_v32  ;;  %v1693_v47 = vunpack.i.l.bf16 %v1692_v32 }
 0x302   : > { %v912_v34 = vrot.slane %v1704_v27, 4  ;;  %v817_v37 = vrot.slane %v1703_v31, 4  ;;  %v821_v38 = vsel %vm818_vm1, %v1703_v31, %v820_v1  ;;  %v915_v39 = vsel %vm818_vm1, %v1704_v27, %v914_v22 }
 0x303   : > { %v829_v20 = vperm.slane %v821_v38, %v2169_v10  ;;  %v923_v43 = vperm.slane %v915_v39, %v2169_v10  ;;  %v936_v56 = vrot.slane %v1694_v46, 4  ;;  %v842_v58 = vrot.slane %v1693_v47, 4 }
 0x304   : > { %v913_v42 = vsel %vm818_vm1, %v912_v34, %v2103_v30  ;;  %v819_v44 = vsel %vm818_vm1, %v817_v37, %v2101_v24 }
 0x305   : > { %v919_v48 = vperm.slane %v913_v42, %v2169_v10  ;;  %v825_v49 = vperm.slane %v819_v44, %v2169_v10  ;;  %v2204_v60 = vsel %vm818_vm1, %v878_v50, %v829_v20  ;;  %v2207_v57 = vsel %vm818_vm1, %v972_v28, %v923_v43 }
 0x306   : > { %v883_v23 = vperm.slane %v2204_v60, %v2180_v15  ;;  %v977_v6 = vperm.slane %v2207_v57, %v2180_v15 }
 0x307   : > { %v962_v51 = vrot.slane %v919_v48, 4  ;;  %v868_v53 = vrot.slane %v825_v49, 4  ;;  %v867_v30 = vsel %vm818_vm1, %v866_v40, %v825_v49  ;;  %v961_v24 = vsel %vm818_vm1, %v960_v26, %v919_v48 }
 0x308   : > { %v1707_v59 = vpop.permute.xlu1 %1706  ;;  %v873_v0 = vperm.slane %v867_v30, %v2180_v15  ;;  %v967_v4 = vperm.slane %v961_v24, %v2180_v15 }
 0x309   : > { %v1709_v7 = vunpack.i.h.bf16 %v1707_v59  ;;  %v1708_v61 = vunpack.i.l.bf16 %v1707_v59  ;;  %v869_v62 = vsel %vm818_vm1, %v837_v12, %v868_v53  ;;  %v963_v63 = vsel %vm818_vm1, %v931_v13, %v962_v51 }
 0x30a   : > { %v877_v5 = vperm.slane %v869_v62, %v2180_v15  ;;  %v971_v11 = vperm.slane %v963_v63, %v2180_v15  ;;  %v904_v19 = vrot.slane %v873_v0, 4  ;;  %v998_v31 = vrot.slane %v967_v4, 4 }
 0x30b   : > { %v938_v9 = vrot.slane %v1709_v7, 4  ;;  %v843_v14 = vsel %vm818_vm1, %v842_v58, %v1708_v61  ;;  %v844_v18 = vrot.slane %v1708_v61, 4  ;;  %v937_v21 = vsel %vm818_vm1, %v936_v56, %v1709_v7 }
 0x30c   : > { %v849_v3 = vperm.slane %v843_v14, %v2169_v10  ;;  %v943_v1 = vperm.slane %v937_v21, %v2169_v10  ;;  %v1002_v37 = vrot.slane %v971_v11, 4 }
 0x30d   : > { %v845_v16 = vsel %vm818_vm1, %v1693_v47, %v844_v18  ;;  %v939_v2 = vsel %vm818_vm1, %v1694_v46, %v938_v9  ;;  %v1560_v18 = vld [vmem:[%s2367_s7] sm:$0xff] }
 0x30e   : > { %v853_v12 = vperm.slane %v845_v16, %v2169_v10  ;;  %v886_v13 = vrot.slane %v849_v3, 4  ;;  %v947_v17 = vperm.slane %v939_v2, %v2169_v10  ;;  %v980_v22 = vrot.slane %v943_v1, 4 }
 0x30f   : > { %v885_v25 = vsel %vm818_vm1, %v884_v55, %v849_v3  ;;  %v979_v27 = vsel %vm818_vm1, %v978_v54, %v943_v1  ;;  %v908_v10 = vrot.slane %v877_v5, 4 }
 0x310   : > { %v887_v32 = vsel %vm818_vm1, %v861_v41, %v886_v13  ;;  %v897_v33 = vsel %vm818_vm1, %v896_v52, %v853_v12  ;;  %v981_v35 = vsel %vm818_vm1, %v955_v29, %v980_v22  ;;  %v991_v36 = vsel %vm818_vm1, %v990_v45, %v947_v17 }
 0x311   : > { %v891_v8 = vperm.slane %v885_v25, %v2180_v15  ;;  %v985_v34 = vperm.slane %v979_v27, %v2180_v15  ;;  %v901_v38 = vperm.slane %v897_v33, %v2180_v15  ;;  %v995_v39 = vperm.slane %v991_v36, %v2180_v15 }
 0x312   : > { %v895_v40 = vperm.slane %v887_v32, %v2180_v15  ;;  %v989_v26 = vperm.slane %v981_v35, %v2180_v15 }
 0x313   : > { %v902_v41 = vrot.slane %v891_v8, 4  ;;  %v905_v42 = vsel %vm818_vm1, %v891_v8, %v904_v19  ;;  %v996_v29 = vrot.slane %v985_v34, 4  ;;  %v999_v44 = vsel %vm818_vm1, %v985_v34, %v998_v31 }
 0x314   : > { %v1008_v46 = vpack.c.bf16 %v905_v42, %v905_v42  ;;  %v1009_v47 = vpack.c.bf16 %v999_v44, %v999_v44  ;;  %v909_v48 = vsel %vm818_vm1, %v895_v40, %v908_v10  ;;  %v1003_v49 = vsel %vm818_vm1, %v989_v26, %v1002_v37 }
 0x315   : > { %v903_v20 = vsel %vm818_vm1, %v902_v41, %v873_v0  ;;  %v997_v43 = vsel %vm818_vm1, %v996_v29, %v967_v4  ;;  %v1012_v50 = vpack.c.bf16 %v909_v48, %v909_v48  ;;  %v1013_v28 = vpack.c.bf16 %v1003_v49, %v1003_v49  ;;  %v1197_v48 = vpop.permute.xlu2 %1196 }
 0x316   : > { %v1064_v45 = vunpack.c.l.b16 %v1008_v46  ;;  %v1065_v15 = vunpack.c.l.b16 %v1009_v47  ;;  %v1006_v52 = vpack.c.bf16 %v903_v20, %v903_v20  ;;  %v1007_v51 = vpack.c.bf16 %v997_v43, %v997_v43  ;;  %v1202_v47 = vpop.permute.xlu0 %1201  ;;  %v1207_v20 = vpop.permute.xlu1 %1206 }
 0x317   : > { %v1114_v53 = vunpack.c.l.b16 %v1012_v50  ;;  %v1115_v30 = vunpack.c.l.b16 %v1013_v28  ;;  %v906_v24 = vrot.slane %v895_v40, 4  ;;  %v1000_v54 = vrot.slane %v989_v26, 4 }
 0x318   : > { %v1066_v55 = vpack.c.b16 %v1065_v15, %v1064_v45  ;;  %v1032_v56 = vunpack.c.l.b16 %v1006_v52  ;;  %v1033_v58 = vunpack.c.l.b16 %v1007_v51  ;;  %v910_v59 = vrot.slane %v901_v38, 4 }
 0x319   : > { %v1116_v60 = vpack.c.b16 %v1115_v30, %v1114_v53  ;;  %v907_v57 = vsel %vm818_vm1, %v906_v24, %v877_v5  ;;  %v1001_v7 = vsel %vm818_vm1, %v1000_v54, %v971_v11  ;;  %v1004_v61 = vrot.slane %v995_v39, 4  ;;  %v1562_v11 = vld [vmem:[%s2366_s6] sm:$0xff] }
 0x31a   : > { %1075 = vmatpush.bf16.msrb.mxu3 %v1066_v55  ;;  %v1034_v62 = vpack.c.b16 %v1033_v58, %v1032_v56  ;;  %v1010_v63 = vpack.c.bf16 %v907_v57, %v907_v57  ;;  %v1011_v0 = vpack.c.bf16 %v1001_v7, %v1001_v7  ;;  %v911_v4 = vsel %vm818_vm1, %v910_v59, %v883_v23 }
 0x31b   : > { %v1005_v9 = vsel %vm818_vm1, %v1004_v61, %v977_v6  ;;  %v1014_v14 = vpack.c.bf16 %v911_v4, %v911_v4  ;;  %v1561_v6 = vld [vmem:[%s2367_s7 + $0x8] sm:$0xff]  ;;  %1337 = vmatpush.bf16.msra.mxu1 %v1562_v11 }
 0x31c   : > { %1050 = vmatpush.bf16.msra.mxu2 %v1034_v62  ;;  %v1089_v21 = vunpack.c.l.b16 %v1010_v63  ;;  %v1090_v3 = vunpack.c.l.b16 %v1011_v0  ;;  %v1015_v1 = vpack.c.bf16 %v1005_v9, %v1005_v9 }
 0x31d   : > { %v1139_v16 = vunpack.c.l.b16 %v1014_v14  ;;  %1530 = vmatmul.msk.bf16.vlgmr.msrb.gmra.mxu3 %vm1036_vm2, %v1560_v18  ;;  %v1212_v28 = vpop.permute.xlu2 %1211 }
 0x31e   : > { %1125 = vmatpush.bf16.msra.mxu3 %v1116_v60  ;;  %v1091_v2 = vpack.c.b16 %v1090_v3, %v1089_v21  ;;  %v1140_v5 = vunpack.c.l.b16 %v1015_v1  ;;  %v1217_v43 = vpop.permute.xlu0 %1216  ;;  %v1222_v15 = vpop.permute.xlu1 %1221 }
 0x31f   : > { %1528 = vmatmul.msk.bf16.vlgmr.msra.gmra.mxu2 %vm1036_vm2, %v1560_v18 }
 0x320   : > { %1100 = vmatpush.bf16.msrb.mxu2 %v1091_v2  ;;  %v1141_v23 = vpack.c.b16 %v1140_v5, %v1139_v16 }
 0x322   : > { %1150 = vmatpush.bf16.msra.mxu0 %v1141_v23  ;;  %1566 = vmatpush.bf16.msrb.mxu3 %v1562_v11 }
 0x325   : > { %1536 = vmatmul.msk.bf16.vlgmr.msra.gmra.mxu0 %vm1036_vm2, %v1560_v18  ;;  %v1227_v51 = vpop.permute.xlu2 %1226 }
 0x326   : > { %v1232_v52 = vpop.permute.xlu0 %1231  ;;  %v1237_v30 = vpop.permute.xlu1 %1236 }
 0x32d   : > { %1531 = vmatmul.msk.bf16.gmra.mxu3 %vm1036_vm2, %v1561_v6  ;;  %v1242_v55 = vpop.permute.xlu2 %1241 }
 0x32e   : > { %v1247_v54 = vpop.permute.xlu0 %1246  ;;  %v1252_v56 = vpop.permute.xlu1 %1251 }
 0x32f   : > { %1529 = vmatmul.msk.bf16.gmra.mxu2 %vm1036_vm2, %v1561_v6 }
 0x335   : > { %1537 = vmatmul.msk.bf16.gmra.mxu0 %vm1036_vm2, %v1561_v6  ;;  %v1257_v57 = vpop.permute.xlu2 %1256 }
 0x336   : > { %v2279_v58 = vpop.permute.xlu0 %1261  ;;  %v1267_v7 = vpop.permute.xlu1 %1266 }
 0x33d   : > { %1534 = vmatmul.msk.bf16.vlgmr.msra.gmra.mxu3 %vm1036_vm2, %v1560_v18  ;;  %v1272_v9 = vpop.permute.xlu2 %1271 }
 0x33e   : > { %v1277_v61 = vpop.permute.xlu0 %1276  ;;  %v1282_v14 = vpop.permute.xlu1 %1281 }
 0x33f   : > { %1532 = vmatmul.msk.bf16.vlgmr.msrb.gmra.mxu2 %vm1036_vm2, %v1560_v18 }
 0x345   : > { %v1287_v16 = vpop.permute.xlu2 %1286 }
 0x346   : > { %v1292_v11 = vpop.permute.xlu0 %1291 }
 0x34d   : > { %1535 = vmatmul.msk.bf16.gmra.mxu3 %vm1036_vm2, %v1561_v6 }
 0x34f   : > { %1533 = vmatmul.msk.bf16.gmra.mxu2 %vm1036_vm2, %v1561_v6 }
 0x3a0   : > { %v1077_v32 = vpop.f32.mrf.mxu3 }
 0x3a2   : > { %v1152_v12 = vpop.f32.mrf.mxu0  ;;  %v1052_v13 = vpop.f32.mrf.mxu2 }
 0x3a8   : > { %v1079_v34 = vpop.f32.mrf.mxu3 }
 0x3a9   : > { %v1164_v10 = vpack.c.bf16 %v1079_v34, %v1077_v32 }
 0x3aa   : > { %v1154_v17 = vpop.f32.mrf.mxu0  ;;  %v1054_v22 = vpop.f32.mrf.mxu2 }
 0x3ab   : > { %v1170_v25 = vpack.c.bf16 %v1154_v17, %v1152_v12  ;;  %v1162_v19 = vpack.c.bf16 %v1054_v22, %v1052_v13 }
 0x3ad   : > { %1550 = vmatmul.msk.bf16.vlgmr.msrb.gmra.mxu3 %vm1036_vm2, %v1170_v25  ;;  %1542 = vmatmul.msk.bf16.vlgmr.msra.gmra.mxu1 %vm1036_vm2, %v1162_v19 }
 0x3b0   : > { %v1082_v37 = vpop.f32.mrf.mxu3 }
 0x3b2   : > { %v1157_v27 = vpop.f32.mrf.mxu0  ;;  %v1057_v31 = vpop.f32.mrf.mxu2 }
 0x3b8   : > { %v1084_v38 = vpop.f32.mrf.mxu3 }
 0x3b9   : > { %v1165_v40 = vpack.c.bf16 %v1084_v38, %v1082_v37 }
 0x3ba   : > { %v1159_v33 = vpop.f32.mrf.mxu0  ;;  %v1059_v35 = vpop.f32.mrf.mxu2 }
 0x3bb   : > { %v1171_v36 = vpack.c.bf16 %v1159_v33, %v1157_v27  ;;  %v1163_v8 = vpack.c.bf16 %v1059_v35, %v1057_v31 }
 0x3bd   : > { %1551 = vmatmul.msk.bf16.gmra.mxu3 %vm1036_vm2, %v1171_v36  ;;  %1543 = vmatmul.msk.bf16.gmra.mxu1 %vm1036_vm2, %v1163_v8 }
 0x3c0   : > { %v1127_v44 = vpop.f32.mrf.mxu3 }
 0x3c2   : > { %v1102_v39 = vpop.f32.mrf.mxu2 }
 0x3c8   : > { %v1129_v49 = vpop.f32.mrf.mxu3 }
 0x3c9   : > { %v1168_v50 = vpack.c.bf16 %v1129_v49, %v1127_v44 }
 0x3ca   : > { %v1104_v26 = vpop.f32.mrf.mxu2 }
 0x3cb   : > { %v1166_v41 = vpack.c.bf16 %v1104_v26, %v1102_v39 }
 0x3cd   : > { %1544 = vmatmul.msk.bf16.gmra.mxu1 %vm1036_vm2, %v1164_v10 }
 0x3d0   : > { %v1132_v45 = vpop.f32.mrf.mxu3 }
 0x3d2   : > { %v1107_v42 = vpop.f32.mrf.mxu2 }
 0x3d8   : > { %v1134_v53 = vpop.f32.mrf.mxu3 }
 0x3d9   : > { %v1169_v24 = vpack.c.bf16 %v1134_v53, %v1132_v45 }
 0x3da   : > { %v1109_v29 = vpop.f32.mrf.mxu2 }
 0x3db   : > { %v1167_v46 = vpack.c.bf16 %v1109_v29, %v1107_v42 }
 0x3dd   : > { %1545 = vmatmul.msk.bf16.gmra.mxu1 %vm1036_vm2, %v1165_v40 }
 0x3ed   : > { %1546 = vmatmul.msk.bf16.gmra.mxu1 %vm1036_vm2, %v1166_v41 }
 0x3fd   : > { %1547 = vmatmul.msk.bf16.gmra.mxu1 %vm1036_vm2, %v1167_v46 }
 0x40d   : > { %1548 = vmatmul.msk.bf16.gmra.mxu1 %vm1036_vm2, %v1168_v50 }
 0x41d   : > { %1549 = vmatmul.msk.bf16.gmra.mxu1 %vm1036_vm2, %v1169_v24 }
 0x42a   : > { %v1339_v59 = vpop.f32.mrf.mxu1 }
 0x42b   : > { %v1340_v60 = vadd.f32 %v1339_v59, %v1197_v48 }
 0x42d   : > { %1390 = vst.msk [vmem:[%s2283_s17] sm:$0xff] %vm1389_vm3, %v1340_v60 }
 0x430   : > { %v1379_v62 = vpop.f32.mrf.mxu3 }
 0x431   : > { %v1380_v63 = vadd.f32 %v1379_v62, %v1277_v61 }
 0x432   : > { %v1341_v0 = vpop.f32.mrf.mxu1 }
 0x433   : > { %1406 = vst.msk [vmem:[%s2283_s17 + $0x80] sm:$0xff] %vm1389_vm3, %v1380_v63  ;;  %v1342_v4 = vadd.f32 %v1341_v0, %v1202_v47 }
 0x435   : > { %1391 = vst.msk [vmem:[%s2283_s17 + $0x8] sm:$0xff] %vm1389_vm3, %v1342_v4 }
 0x438   : > { %v1381_v18 = vpop.f32.mrf.mxu3 }
 0x439   : > { %v1382_v21 = vadd.f32 %v1381_v18, %v1282_v14 }
 0x43a   : > { %v1344_v3 = vpop.f32.mrf.mxu1 }
 0x43b   : > { %1407 = vst.msk [vmem:[%s2283_s17 + $0x88] sm:$0xff] %vm1389_vm3, %v1382_v21  ;;  %v1345_v1 = vadd.f32 %v1344_v3, %v1207_v20 }
 0x43d   : > { %1392 = vst.msk [vmem:[%s2283_s17 + $0x10] sm:$0xff] %vm1389_vm3, %v1345_v1 }
 0x440   : > { %v1384_v2 = vpop.f32.mrf.mxu3 }
 0x441   : > { %v1385_v5 = vadd.f32 %v1384_v2, %v1287_v16 }
 0x442   : > { %v1346_v23 = vpop.f32.mrf.mxu1 }
 0x443   : > { %1408 = vst.msk [vmem:[%s2283_s17 + $0x90] sm:$0xff] %vm1389_vm3, %v1385_v5  ;;  %v1347_v6 = vadd.f32 %v1346_v23, %v1212_v28 }
 0x445   : > { %1393 = vst.msk [vmem:[%s2283_s17 + $0x18] sm:$0xff] %vm1389_vm3, %v1347_v6 }
 0x448   : > { %v1386_v12 = vpop.f32.mrf.mxu3 }
 0x449   : > { %v1387_v13 = vadd.f32 %v1386_v12, %v1292_v11 }
 0x44a   : > { %v1349_v17 = vpop.f32.mrf.mxu1 }
 0x44b   : > { %1409 = vst.msk [vmem:[%s2283_s17 + $0x98] sm:$0xff] %vm1389_vm3, %v1387_v13  ;;  %v1350_v22 = vadd.f32 %v1349_v17, %v1217_v43 }
 0x44d   : > { %1394 = vst.msk [vmem:[%s2283_s17 + $0x20] sm:$0xff] %vm1389_vm3, %v1350_v22 }
 0x452   : > { %v1351_v25 = vpop.f32.mrf.mxu1 }
 0x453   : > { %v1352_v19 = vadd.f32 %v1351_v25, %v1222_v15 }
 0x455   : > { %1395 = vst.msk [vmem:[%s2283_s17 + $0x28] sm:$0xff] %vm1389_vm3, %v1352_v19 }
 0x45a   : > { %v1354_v27 = vpop.f32.mrf.mxu1 }
 0x45b   : > { %v1355_v31 = vadd.f32 %v1354_v27, %v1227_v51 }
 0x45d   : > { %1396 = vst.msk [vmem:[%s2283_s17 + $0x30] sm:$0xff] %vm1389_vm3, %v1355_v31 }
 0x462   : > { %v1356_v32 = vpop.f32.mrf.mxu1 }
 0x463   : > { %v1357_v33 = vadd.f32 %v1356_v32, %v1232_v52 }
 0x465   : > { %1397 = vst.msk [vmem:[%s2283_s17 + $0x38] sm:$0xff] %vm1389_vm3, %v1357_v33 }
 0x46a   : > { %v1359_v35 = vpop.f32.mrf.mxu1 }
 0x46b   : > { %v1360_v36 = vadd.f32 %v1359_v35, %v1237_v30 }
 0x46d   : > { %1398 = vst.msk [vmem:[%s2283_s17 + $0x40] sm:$0xff] %vm1389_vm3, %v1360_v36 }
 0x472   : > { %v1361_v8 = vpop.f32.mrf.mxu1 }
 0x473   : > { %v1362_v34 = vadd.f32 %v1361_v8, %v1242_v55 }
 0x475   : > { %1399 = vst.msk [vmem:[%s2283_s17 + $0x48] sm:$0xff] %vm1389_vm3, %v1362_v34 }
 0x47a   : > { %v1364_v10 = vpop.f32.mrf.mxu1 }
 0x47b   : > { %v1365_v37 = vadd.f32 %v1364_v10, %v1247_v54 }
 0x47d   : > { %1400 = vst.msk [vmem:[%s2283_s17 + $0x50] sm:$0xff] %vm1389_vm3, %v1365_v37 }
 0x482   : > { %v1366_v38 = vpop.f32.mrf.mxu1 }
 0x483   : > { %v1367_v39 = vadd.f32 %v1366_v38, %v1252_v56 }
 0x485   : > { %1401 = vst.msk [vmem:[%s2283_s17 + $0x58] sm:$0xff] %vm1389_vm3, %v1367_v39 }
 0x48a   : > { %v1369_v40 = vpop.f32.mrf.mxu1 }
 0x48b   : > { %v1370_v26 = vadd.f32 %v1369_v40, %v1257_v57 }
 0x48d   : > { %1402 = vst.msk [vmem:[%s2283_s17 + $0x60] sm:$0xff] %vm1389_vm3, %v1370_v26 }
 0x492   : > { %v1371_v41 = vpop.f32.mrf.mxu1 }
 0x493   : > { %v1372_v42 = vadd.f32 %v1371_v41, %v2279_v58 }
 0x495   : > { %1403 = vst.msk [vmem:[%s2283_s17 + $0x68] sm:$0xff] %vm1389_vm3, %v1372_v42 }
 0x49a   : > { %v1374_v29 = vpop.f32.mrf.mxu1 }
 0x49b   : > { %v1375_v44 = vadd.f32 %v1374_v29, %v1267_v7 }
 0x49d   : > { %1404 = vst.msk [vmem:[%s2283_s17 + $0x70] sm:$0xff] %vm1389_vm3, %v1375_v44 }
 0x4a2   : > { %v1376_v46 = vpop.f32.mrf.mxu1 }
 0x4a3   : > { %v1377_v47 = vadd.f32 %v1376_v46, %v1272_v9 }
 0x4a5   : > { %1405 = vst.msk [vmem:[%s2283_s17 + $0x78] sm:$0xff] %vm1389_vm3, %v1377_v47 }
 0x4a6   : > { %1737 = shalt.err (!%p1734_p3)
}
 0x4a7   : > { %s1791_s12 = smov 128   ;;  %s1792_s17 = smov 8  }
 0x4a8   : > { %1569 = dma.vmem_to_hbm [thread:$0]  (%p1876_p5), %s1424_s22, 2560, %s1426_s23, %s1411_s24, %s1791_s12, %s1791_s12, %s1792_s17  }
 0x4a9 PF: > { %p1575_p4 = scmp.ge.s32.totalorder %s1772_s30, 2  ;;  %s1440_s20 = sand.u32 1, %s1760_s27  }
 0x4aa   : > { %s1441_s21 = scalar_lea.sflag [#allocation3], %s1440_s20 }
 0x4ab   : > { %p1572_p7 = pnand %p1575_p4, %p1880_p6 }
 0x4ad   : > { %p1573_p8 = pneg %p1572_p7 }
 0x4af   : > { %1755 = dma.done.wait (%p1573_p8), %s1441_s21, 2560  }
 0x4b0   : > { %1757 = vsyncadd (%p1573_p8), %s1441_s21, 4294964736  ;;  %p18_p9 = scmp.ge.s32.totalorder %s1863_s11, 4   ;;  %s2379_s27 = smov %s1764_s28 }
 0x4b1   : > { %s2380_s28 = smov %s1768_s29  ;;  %s2381_s29 = smov %s1874_s14 }
 0x4b2   : > { %s2382_s30 = smov %s1863_s11  ;;  %20 = sbr.rel (!%p18_p9) target bundleno = 3 (0x3), region = 87 }
 0x4b7   :  { %1447 = vsyncpa [#allocation3], 1 }
 0x4b8   :  { %1449 = vsyncpa [#allocation3 + $0x1], 1 }

</bundles_post_ra>
